<compile_context>
chip_gen: v7x
topology: tpu7x:2x2x1
jax: 0.10.0
libtpu: 0.0.40
codegen_flags: <defaults>
</compile_context>

<pallas_src>
import numpy as np
import jax
import jax.numpy as jnp
from jax.experimental import pallas as pl
from jax.experimental.pallas import tpu as pltpu


# ----------------------------------------------------------------------------
# Bilinear (align_corners=True) interpolation matrices, built on host (numpy).
# ----------------------------------------------------------------------------
def _interp_matrix(out_size, in_size):
    A = np.zeros((out_size, in_size), dtype=np.float32)
    if out_size == 1:
        A[0, 0] = 1.0
        return A
    scale = (in_size - 1) / (out_size - 1)
    for i in range(out_size):
        src = i * scale
        j0 = min(int(np.floor(src)), in_size - 1)
        j1 = min(j0 + 1, in_size - 1)
        frac = src - j0
        A[i, j0] += 1.0 - frac
        A[i, j1] += frac
    return A


# ----------------------------------------------------------------------------
# Bilinear upsample (align_corners=True): one grid step per batch element,
# all channels batched into two matmuls (up[c] = Ah @ x[c] @ Aw^T).
# ----------------------------------------------------------------------------
def bilinear_upsample_nchw(x_nchw, Ho, Wo):
    N, C, Hi, Wi = x_nchw.shape
    awt = jnp.asarray(_interp_matrix(Wo, Wi).T)   # (Wi, Wo)  pre-transposed on host
    aht = jnp.asarray(_interp_matrix(Ho, Hi).T)   # (Hi, Ho)  pre-transposed on host

    def kernel(x_ref, awt_ref, aht_ref, o_ref):
        xb = x_ref[0]                                                      # (C, Hi, Wi) f32
        t = jax.lax.dot_general(xb, awt_ref[...], (((2,), (0,)), ((), ())),
                                preferred_element_type=jnp.float32)        # (C, Hi, Wo)
        t = jnp.swapaxes(t, 1, 2)                                          # (C, Wo, Hi)
        u = jax.lax.dot_general(t, aht_ref[...], (((2,), (0,)), ((), ())),
                                preferred_element_type=jnp.float32)        # (C, Wo, Ho)
        o_ref[0] = jnp.swapaxes(u, 1, 2).astype(o_ref.dtype)               # (C, Ho, Wo)

    flops = 2 * N * C * (Hi * Wi * Wo + Wo * Hi * Ho)
    bytes_accessed = x_nchw.size * 4 + N * C * Ho * Wo * 2 + (awt.size + aht.size) * 4
    return pl.pallas_call(
        kernel,
        out_shape=jax.ShapeDtypeStruct((N, C, Ho, Wo), jnp.bfloat16),
        grid=(N,),
        in_specs=[
            pl.BlockSpec((1, C, Hi, Wi), lambda n: (n, 0, 0, 0)),
            pl.BlockSpec((Wi, Wo), lambda n: (0, 0)),
            pl.BlockSpec((Hi, Ho), lambda n: (0, 0)),
        ],
        out_specs=pl.BlockSpec((1, C, Ho, Wo), lambda n: (n, 0, 0, 0)),
        compiler_params=pltpu.CompilerParams(
            dimension_semantics=("parallel",),
            vmem_limit_bytes=32 * 1024 * 1024),
        cost_estimate=pl.CostEstimate(flops=int(flops), transcendentals=0,
                                      bytes_accessed=int(bytes_accessed)),
    )(x_nchw.astype(jnp.float32), awt, aht)


# ----------------------------------------------------------------------------
# Fused kernel: [implicit channel-concat] + conv3x3(pad=1) + BN + LeakyReLU,
# applied twice, per batch element.  Zero padding is realized by static per-tap
# windows (no jnp.pad, no padded staging copy); the conv1 activation lives only
# in a VMEM scratch; accumulation is done in an f32 VMEM scratch.
# ----------------------------------------------------------------------------
def _make_fused_conv_kernel(H, W, Cx, Cc, Cm):
    taps = []
    for dy in range(3):
        for dx in range(3):
            oy, ox = dy - 1, dx - 1
            ay, by = max(0, -oy), H - max(0, oy)     # output row window for this tap
            ax, bx = max(0, -ox), W - max(0, ox)     # output col window for this tap
            taps.append((dy, dx, oy, ox, ay, by, ax, bx))

    def kernel(up_ref, cc_ref, w1x_ref, w1c_ref, s1_ref, t1_ref,
               w2_ref, s2_ref, t2_ref, o_ref, acc_ref, y1_ref):
        # Load the two channel groups once (channel concat == split contraction);
        # slicing for the 9 taps happens on these f32 values (register level).
        upf = up_ref[0].astype(jnp.float32)          # (H, W, Cx)
        ccf = cc_ref[0].astype(jnp.float32)          # (H, W, Cc)

        # ---- conv1 (3x3, pad=1) + folded BatchNorm + LeakyReLU ----
        acc_ref[...] = jnp.zeros_like(acc_ref)
        for (dy, dx, oy, ox, ay, by, ax, bx) in taps:
            pu = upf[ay + oy:by + oy, ax + ox:bx + ox, :].astype(jnp.bfloat16)
            pc = ccf[ay + oy:by + oy, ax + ox:bx + ox, :].astype(jnp.bfloat16)
            contrib = jax.lax.dot_general(
                pu, w1x_ref[dy, dx], (((2,), (0,)), ((), ())),
                preferred_element_type=jnp.float32)
            contrib = contrib + jax.lax.dot_general(
                pc, w1c_ref[dy, dx], (((2,), (0,)), ((), ())),
                preferred_element_type=jnp.float32)
            acc_ref[ay:by, ax:bx, :] += contrib
        y = acc_ref[...] * s1_ref[...] + t1_ref[...]          # fused conv-bias + BN (f32)
        y1_ref[...] = jnp.where(y >= 0.0, y, 0.01 * y)        # LeakyReLU; stays in VMEM

        # ---- conv2 (3x3, pad=1) + folded BatchNorm + LeakyReLU ----
        acc_ref[...] = jnp.zeros_like(acc_ref)
        for (dy, dx, oy, ox, ay, by, ax, bx) in taps:
            p = y1_ref[ay + oy:by + oy, ax + ox:bx + ox, :].astype(jnp.bfloat16)
            acc_ref[ay:by, ax:bx, :] += jax.lax.dot_general(
                p, w2_ref[dy, dx], (((2,), (0,)), ((), ())),
                preferred_element_type=jnp.float32)
        z = acc_ref[...] * s2_ref[...] + t2_ref[...]
        o_ref[0] = jnp.where(z >= 0.0, z, 0.01 * z).astype(o_ref.dtype)

    return kernel


def conv_block_x2(up_nhwc, cc_nhwc, w1, s1, t1, w2, s2, t2):
    N, H, W, Cx = up_nhwc.shape
    Cc = cc_nhwc.shape[-1]
    Cm = w1.shape[-1]
    # Split w1 along Cin so the concat never has to be materialized; bf16 weights.
    w1x = w1[:, :, :Cx, :].astype(jnp.bfloat16)
    w1c = w1[:, :, Cx:, :].astype(jnp.bfloat16)
    w2b = w2.astype(jnp.bfloat16)

    kernel = _make_fused_conv_kernel(H, W, Cx, Cc, Cm)
    flops = 2 * N * H * W * 9 * ((Cx + Cc) * Cm + Cm * Cm)
    bytes_accessed = ((up_nhwc.size + cc_nhwc.size) * 2
                      + N * H * W * Cm * 4
                      + (w1x.size + w1c.size + w2b.size) * 2)

    return pl.pallas_call(
        kernel,
        out_shape=jax.ShapeDtypeStruct((N, H, W, Cm), jnp.float32),
        grid=(N,),
        in_specs=[
            pl.BlockSpec((1, H, W, Cx), lambda n: (n, 0, 0, 0)),
            pl.BlockSpec((1, H, W, Cc), lambda n: (n, 0, 0, 0)),
            pl.BlockSpec((3, 3, Cx, Cm), lambda n: (0, 0, 0, 0)),
            pl.BlockSpec((3, 3, Cc, Cm), lambda n: (0, 0, 0, 0)),
            pl.BlockSpec((1, Cm), lambda n: (0, 0)),
            pl.BlockSpec((1, Cm), lambda n: (0, 0)),
            pl.BlockSpec((3, 3, Cm, Cm), lambda n: (0, 0, 0, 0)),
            pl.BlockSpec((1, Cm), lambda n: (0, 0)),
            pl.BlockSpec((1, Cm), lambda n: (0, 0)),
        ],
        out_specs=pl.BlockSpec((1, H, W, Cm), lambda n: (n, 0, 0, 0)),
        scratch_shapes=[
            pltpu.VMEM((H, W, Cm), jnp.float32),   # f32 accumulator (reused by both convs)
            pltpu.VMEM((H, W, Cm), jnp.float32),   # conv1 activation (never hits HBM)
        ],
        compiler_params=pltpu.CompilerParams(
            dimension_semantics=("parallel",),
            vmem_limit_bytes=32 * 1024 * 1024),
        cost_estimate=pl.CostEstimate(flops=int(flops), transcendentals=0,
                                      bytes_accessed=int(bytes_accessed)),
    )(up_nhwc, cc_nhwc, w1x, w1c,
      s1.reshape(1, Cm), t1.reshape(1, Cm), w2b,
      s2.reshape(1, Cm), t2.reshape(1, Cm))


# ----------------------------------------------------------------------------
# UpSampleBN module (functional)
# ----------------------------------------------------------------------------
def _fold_bn(conv_bias, gamma, beta, mean, var, eps=1e-5):
    scale = gamma / jnp.sqrt(var + eps)
    shift = (conv_bias - mean) * scale + beta
    return scale.astype(jnp.float32), shift.astype(jnp.float32)


def init_upsample_bn_params(key, skip_input, output_features):
    ks = jax.random.split(key, 10)
    p = {}
    p["w1"] = 0.05 * jax.random.normal(ks[0], (3, 3, skip_input, output_features), jnp.float32)
    p["b1"] = 0.05 * jax.random.normal(ks[1], (output_features,), jnp.float32)
    p["g1"] = 1.0 + 0.05 * jax.random.normal(ks[2], (output_features,), jnp.float32)
    p["be1"] = 0.05 * jax.random.normal(ks[3], (output_features,), jnp.float32)
    p["m1"] = 0.05 * jax.random.normal(ks[4], (output_features,), jnp.float32)
    p["v1"] = 0.5 + jax.random.uniform(ks[5], (output_features,), jnp.float32)
    p["w2"] = 0.05 * jax.random.normal(ks[6], (3, 3, output_features, output_features), jnp.float32)
    p["b2"] = 0.05 * jax.random.normal(ks[7], (output_features,), jnp.float32)
    p["g2"] = 1.0 + 0.05 * jax.random.normal(ks[8], (output_features,), jnp.float32)
    p["be2"] = 0.05 * jax.random.normal(ks[9], (output_features,), jnp.float32)
    p["m2"] = jnp.zeros((output_features,), jnp.float32)
    p["v2"] = jnp.ones((output_features,), jnp.float32)
    return p


def upsample_bn_forward(params, x_nchw, concat_with_nchw):
    # TODO(synk): BatchNorm is evaluated with running statistics (eval mode);
    # training-mode batch statistics are not reproduced.
    N, Cx, Hi, Wi = x_nchw.shape
    _, Cc, Hc, Wc = concat_with_nchw.shape

    # 1) Pallas bilinear upsample (align_corners=True), all channels per grid step.
    up = bilinear_upsample_nchw(x_nchw, Hc, Wc)                  # (N, Cx, Hc, Wc) bf16

    # 2) Module-boundary layout conversion NCHW -> NHWC (channels -> lane dim).
    up_nhwc = jnp.transpose(up, (0, 2, 3, 1))
    cc_nhwc = jnp.transpose(concat_with_nchw.astype(jnp.bfloat16), (0, 2, 3, 1))

    # 3) One fused Pallas kernel: concat + conv3x3 + BN + LeakyReLU (x2).
    s1, t1 = _fold_bn(params["b1"], params["g1"], params["be1"], params["m1"], params["v1"])
    s2, t2 = _fold_bn(params["b2"], params["g2"], params["be2"], params["m2"], params["v2"])
    y = conv_block_x2(up_nhwc, cc_nhwc, params["w1"], s1, t1, params["w2"], s2, t2)

    return jnp.transpose(y, (0, 3, 1, 2))                        # back to NCHW


# ----------------------------------------------------------------------------
# Pure-JAX reference (same interp matrices and same bf16 quantization points).
# ----------------------------------------------------------------------------
def _reference(params, x_nchw, concat_with_nchw):
    N, Cx, Hi, Wi = x_nchw.shape
    _, Cc, Hc, Wc = concat_with_nchw.shape
    ah = jnp.asarray(_interp_matrix(Hc, Hi))
    aw = jnp.asarray(_interp_matrix(Wc, Wi))
    up = jnp.einsum("oh,nchw,pw->ncop", ah, x_nchw.astype(jnp.float32), aw)
    f = jnp.concatenate([up.astype(jnp.bfloat16),
                         concat_with_nchw.astype(jnp.bfloat16)], axis=1)
    f = jnp.transpose(f, (0, 2, 3, 1))                           # NHWC, bf16

    def block(xin, w, b, g, be, m, v):
        y = jax.lax.conv_general_dilated(
            xin, w.astype(jnp.bfloat16), window_strides=(1, 1), padding="SAME",
            dimension_numbers=("NHWC", "HWIO", "NHWC"),
            preferred_element_type=jnp.float32)
        y = y + b
        y = (y - m) / jnp.sqrt(v + 1e-5) * g + be
        return jnp.where(y >= 0.0, y, 0.01 * y)

    y1 = block(f, params["w1"], params["b1"], params["g1"], params["be1"],
               params["m1"], params["v1"])
    y2 = block(y1.astype(jnp.bfloat16), params["w2"], params["b2"], params["g2"],
               params["be2"], params["m2"], params["v2"])
    return jnp.transpose(y2, (0, 3, 1, 2))


if __name__ == "__main__":
    key = jax.random.PRNGKey(0)
    k_x, k_c, k_p = jax.random.split(key, 3)

    N, Cx, Hx, Wx = 2, 4, 8, 8
    Cc, Hc, Wc = 4, 16, 16
    skip_input = Cx + Cc          # 8
    output_features = 8

    x = jax.random.normal(k_x, (N, Cx, Hx, Wx), jnp.float32)
    concat_with = jax.random.normal(k_c, (N, Cc, Hc, Wc), jnp.float32)
    params = init_upsample_bn_params(k_p, skip_input, output_features)

    out = jax.block_until_ready(upsample_bn_forward(params, x, concat_with))
    ref = jax.block_until_ready(_reference(params, x, concat_with))

    assert out.shape == (N, output_features, Hc, Wc), out.shape
    np.testing.assert_allclose(np.asarray(out), np.asarray(ref), rtol=2e-2, atol=2e-2)

    print("KERNEL_OK")
</pallas_src>

<mosaic_0001>
module attributes {stable_mosaic.version = 11 : i64} {
  func.func @kernel(%arg0: i32, %arg1: memref<1x4x8x8xf32, #tpu.memory_space<vmem>>, %arg2: memref<8x16xf32, #tpu.memory_space<vmem>>, %arg3: memref<8x16xf32, #tpu.memory_space<vmem>>, %arg4: memref<1x4x16x16xbf16, #tpu.memory_space<vmem>>) attributes {dimension_semantics = [#tpu.dimension_semantics<parallel>], iteration_bounds = array<i64: 2>, scalar_prefetch = 0 : i64, scratch_operands = 0 : i64, tpu.core_type = #tpu.core_type<tc>, window_params = [{transform_indices = @transform_0, window_bounds = array<i64: 1, 4, 8, 8>}, {pipeline_mode = #tpu.pipeline_mode<synchronous>, transform_indices = @transform_1, window_bounds = array<i64: 8, 16>}, {pipeline_mode = #tpu.pipeline_mode<synchronous>, transform_indices = @transform_2, window_bounds = array<i64: 8, 16>}, {transform_indices = @transform_3, window_bounds = array<i64: 1, 4, 16, 16>}]} {
    %c0 = arith.constant 0 : index
    %c0_0 = arith.constant 0 : index
    %c0_1 = arith.constant 0 : index
    %c0_2 = arith.constant 0 : index
    %0 = vector.load %arg1[%c0, %c0_0, %c0_1, %c0_2] : memref<1x4x8x8xf32, #tpu.memory_space<vmem>>, vector<1x4x8x8xf32>
    %1 = vector.shape_cast %0 : vector<1x4x8x8xf32> to vector<4x8x8xf32>
    %c0_3 = arith.constant 0 : index
    %c0_4 = arith.constant 0 : index
    %2 = vector.load %arg2[%c0_3, %c0_4] : memref<8x16xf32, #tpu.memory_space<vmem>>, vector<8x16xf32>
    %cst = arith.constant dense<0.000000e+00> : vector<4x8x16xf32>
    %3 = tpu.matmul %1, %2, %cst {dimension_numbers = #tpu.dot_dimension_numbers<[2], [0], [0, 1], [1], [0, 0, 0, 1, 1, 1], [], []>} : vector<4x8x8xf32>, vector<8x16xf32>, vector<4x8x16xf32> -> vector<4x8x16xf32>
    %4 = tpu.transpose %3, [0, 2, 1] : vector<4x8x16xf32> -> vector<4x16x8xf32>
    %c0_5 = arith.constant 0 : index
    %c0_6 = arith.constant 0 : index
    %5 = vector.load %arg3[%c0_5, %c0_6] : memref<8x16xf32, #tpu.memory_space<vmem>>, vector<8x16xf32>
    %cst_7 = arith.constant dense<0.000000e+00> : vector<4x16x16xf32>
    %6 = tpu.matmul %4, %5, %cst_7 {dimension_numbers = #tpu.dot_dimension_numbers<[2], [0], [0, 1], [1], [0, 0, 0, 1, 1, 1], [], []>} : vector<4x16x8xf32>, vector<8x16xf32>, vector<4x16x16xf32> -> vector<4x16x16xf32>
    %7 = tpu.transpose %6, [0, 2, 1] : vector<4x16x16xf32> -> vector<4x16x16xf32>
    %8 = arith.truncf %7 : vector<4x16x16xf32> to vector<4x16x16xbf16>
    %c0_8 = arith.constant 0 : index
    %c0_9 = arith.constant 0 : index
    %c0_10 = arith.constant 0 : index
    %c0_11 = arith.constant 0 : index
    %9 = vector.load %arg4[%c0_8, %c0_9, %c0_10, %c0_11] : memref<1x4x16x16xbf16, #tpu.memory_space<vmem>>, vector<1x4x16x16xbf16>
    %10 = vector.shape_cast %9 : vector<1x4x16x16xbf16> to vector<4x16x16xbf16>
    %11 = vector.shape_cast %8 : vector<4x16x16xbf16> to vector<1x4x16x16xbf16>
    tpu.vector_store %arg4[%c0_8, %c0_9, %c0_10, %c0_11], %11 {strides = array<i32>} : memref<1x4x16x16xbf16, #tpu.memory_space<vmem>>, vector<1x4x16x16xbf16>,
    return
  }
  func.func @transform_0(%arg0: i32) -> (i32, i32, i32, i32) {
    %c0_i32 = arith.constant 0 : i32
    %c0_i32_0 = arith.constant 0 : i32
    %c0_i32_1 = arith.constant 0 : i32
    %c0_i32_2 = arith.constant 0 : i32
    return %arg0, %c0_i32, %c0_i32_0, %c0_i32_1 : i32, i32, i32, i32
  }
  func.func @transform_1(%arg0: i32) -> (i32, i32) {
    %c0_i32 = arith.constant 0 : i32
    %c0_i32_0 = arith.constant 0 : i32
    %c0_i32_1 = arith.constant 0 : i32
    return %c0_i32, %c0_i32_0 : i32, i32
  }
  func.func @transform_2(%arg0: i32) -> (i32, i32) {
    %c0_i32 = arith.constant 0 : i32
    %c0_i32_0 = arith.constant 0 : i32
    %c0_i32_1 = arith.constant 0 : i32
    return %c0_i32, %c0_i32_0 : i32, i32
  }
  func.func @transform_3(%arg0: i32) -> (i32, i32, i32, i32) {
    %c0_i32 = arith.constant 0 : i32
    %c0_i32_0 = arith.constant 0 : i32
    %c0_i32_1 = arith.constant 0 : i32
    %c0_i32_2 = arith.constant 0 : i32
    return %arg0, %c0_i32, %c0_i32_0, %c0_i32_1 : i32, i32, i32, i32
  }
}

</mosaic_0001>

<bundles_post_ra>
// kernel: tpu_custom_call.1
= control target key start
LH: loop header
LB: loop body
LE: loop exit
PB: predicated region body
PF: predicated region fallthrough
CT: control target
= control target key end

     0   :  { %8 = vsyncpa [#allocation3], 0  ;;  %s1477_s0 = inlined_call_operand.hbm [shape: f32[2,4,8,8], index: 0, kind: input, shape index: {}]   ;;  %s1478_s1 = inlined_call_operand.hbm [shape: f32[8,16], index: 1, kind: input, shape index: {}]   ;;  %s1479_s2 = inlined_call_operand.hbm [shape: f32[8,16], index: 2, kind: input, shape index: {}]   ;;  %s1480_s3 = inlined_call_operand.hbm [shape: bf16[2,4,16,16], index: 3, kind: output, shape index: {}]  }
   0x1   :  { %10 = vsyncpa [#allocation3 + $0x1], 0 }
   0x2   :  { %11 = vsyncpa [#allocation6], 0 }
   0x3   :  { %12 = vsyncpa [#allocation4], 0 }
   0x4   :  { %14 = vsyncpa [#allocation4 + $0x1], 0  ;;  %s1222_s12 = smov 0   ;;  %s1224_s13 = smov 0  }
   0x5   :  { %s1226_s14 = smov 0   ;;  %s1228_s15 = smov 0  }
   0x6 LB: > { %s1243_s16 = sadd.s32 4294967295, %s1192_s15   ;;  %s850_s17 = sadd.s32 4294967294, %s1192_s15   ;;  %s1192_s15 = sphi %s1228_s15, %s1505_s15   ;;  %s1188_s14 = sphi %s1226_s14, %s1504_s14   ;;  %s1184_s13 = sphi %s1224_s13, %s1503_s13   ;;  %s1180_s12 = sphi %s1222_s12, %s1502_s12  }
   0x7   : > { %s1247_s18 = sadd.s32 1, %s1192_s15   ;;  %s27_s19 = sadd.s32 1, %s1188_s14 }
   0x8   : > { %s24_s20 = ssub.s32 %s1192_s15, %s1247_s18  ;;  %p34_p0 = scmp.ne.s32.totalorder %s1188_s14, %s1184_s13 }
   0x9   : > { %p25_p1 = scmp.eq.s32.totalorder %s24_s20, 0  ;;  %p35_p2 = scmp.eq.s32.totalorder %s1192_s15, 0 }
   0xa   : > { %p40_p3 = scmp.ne.s32.totalorder %s1184_s13, %s1180_s12  ;;  %p1481_p4 = scmp.eq.s32.totalorder %s1243_s16, 0 }
   0xb   : > { %s1259_s21 = scalar_select %p25_p1, %s1188_s14, %s27_s19  }
   0xc   : > { %p1261_p5 = por %p35_p2, %p34_p0  ;;  %p1267_p6 = por %p1481_p4, %p40_p3 }
   0xd   : > { %p106_p7 = scmp.eq.s32.totalorder %s1243_s16, 1  ;;  %p112_p8 = scmp.eq.s32.totalorder %s850_s17, 1 }
   0xe   : > { %s1487_s23 = scalar_select %p1267_p6, 1, 0 }
   0xf   : > { %p851_p9 = scmp.ge.s32.totalorder %s1192_s15, 1  ;;  %p119_p10 = scmp.lt.s32.totalorder %s1192_s15, 3 }
  0x10   : > { %p1274_p11 = por %p106_p7, %p34_p0  ;;  %p1278_p12 = por %p112_p8, %p40_p3 }
  0x11   : > { %p1282_p13 = pnand %p851_p9, %p119_p10  ;;  %s1194_s27 = smov [#allocation5]  }
  0x12   : > { %s1488_s24 = scalar_select %p1274_p11, 1, 0 }
  0x13   : > { %s1489_s25 = scalar_select %p1278_p12, 1, 0 }
  0x14   : > { %s1490_s26 = scalar_select %p1282_p13, 1, 0 }
  0x15   : > { %p948_p2 = pneg %p1282_p13  ;;  %s132_s28 = sshll.u32 %s1194_s27, 4  ;;  %s133_s28 = int_to_ptr.vmem [resolvable:$true] %s132_s28 }
  0x16   : > { %p965_p4 = scmp.lt.s32.totalorder %s1192_s15, 2  ;;  %p1491_p0 = scmp.eq.s32.totalorder %s1243_s16, 0 }
  0x17   : > { %s1195_s4 = smov [#allocation7]   ;;  %s1036_s8 = scalar_lea.hbm %s1478_s1, 128 }
  0x18   : > { %p1292_p7 = pnand %p948_p2, %p1491_p0  ;;  %p1298_p3 = pnand %p965_p4, %p1261_p5 }
  0x19   : > { %s143_s5 = sshll.u32 %s1195_s4, 4  ;;  %p1037_p8 = scmp.ne.s32.totalorder %s1478_s1, %s1036_s8  ;;  %s1302_s5 = int_to_ptr.vmem [resolvable:$true] %s143_s5 }
  0x1a   : > { %s1493_s30 = scalar_select %p1298_p3, 1, 0 }
  0x1b   : > { %p1038_p9 = pneg %p1292_p7  ;;  %p1043_p10 = scmp.lt.u32.totalorder %s1036_s8, %s1478_s1 }
  0x1d   : > { %p1039_p4 = pnand %p1038_p9, %p1037_p8 }
  0x1f   : > { %p1040_p5 = pneg %p1039_p4 }
  0x21   : > { %p1045_p2 = pnand %p1043_p10, %p1040_p5 }
  0x23   : > { %1048 = shalt.err (!%p1045_p2)
}
  0x24   : > { %s1049_s19 = scalar_lea.vmem %s133_s28, 128  ;;  %p1057_p11 = scmp.lt.s32.totalorder %s133_s28, %s133_s28 }
  0x25   : > { %p1050_p0 = scmp.ne.s32.totalorder %s133_s28, %s1049_s19  ;;  %p1058_p6 = scmp.lt.s32.totalorder %s1049_s19, %s1049_s19 }
  0x27   : > { %p1052_p1 = pnand %p1050_p0, %p1038_p9  ;;  %p1059_p13 = por %p1058_p6, %p1057_p11 }
  0x29   : > { %p1053_p12 = pneg %p1052_p1 }
  0x2b   : > { %p1060_p3 = pnand %p1059_p13, %p1053_p12 }
  0x2d   : > { %1063 = shalt.err (!%p1060_p3)
}
  0x2e   : > { %951 = dma.hbm_to_vmem [thread:$0]  (!%p1292_p7), %s1478_s1, 128, %s133_s28, [#allocation6]  }
  0x2f   : > { %s154_s27 = sand.u32 1, %s1188_s14   ;;  %s1064_s7 = scalar_lea.hbm %s1479_s2, 128 }
  0x30   : > { %p1065_p1 = scmp.ne.s32.totalorder %s1479_s2, %s1064_s7  ;;  %p1071_p12 = scmp.lt.u32.totalorder %s1064_s7, %s1479_s2 }
  0x32   : > { %p1067_p6 = pnand %p1065_p1, %p1038_p9 }
  0x34   : > { %p1068_p11 = pneg %p1067_p6 }
  0x36   : > { %p1073_p13 = pnand %p1071_p12, %p1068_p11 }
  0x38   : > { %1076 = shalt.err (!%p1073_p13)
}
  0x39   : > { %s1077_s28 = scalar_lea.vmem %s1302_s5, 128  ;;  %p1085_p5 = scmp.lt.s32.totalorder %s1302_s5, %s1302_s5 }
  0x3a   : > { %p1078_p3 = scmp.ne.s32.totalorder %s1302_s5, %s1077_s28  ;;  %p1086_p10 = scmp.lt.s32.totalorder %s1077_s28, %s1077_s28 }
  0x3c   : > { %p1080_p8 = pnand %p1078_p3, %p1038_p9  ;;  %p1087_p2 = por %p1086_p10, %p1085_p5 }
  0x3e   : > { %p1081_p4 = pneg %p1080_p8 }
  0x40   : > { %p1088_p0 = pnand %p1087_p2, %p1081_p4 }
  0x42   : > { %1091 = shalt.err (!%p1088_p0)
}
  0x43   : > { %954 = dma.hbm_to_vmem [thread:$0]  (!%p1292_p7), %s1479_s2, 128, %s1302_s5, [#allocation6]  }
  0x44   : > { %s855_s20 = sshll.u32 %s154_s27, 5  ;;  %s888_s22 = sshll.u32 %s1192_s15, 9 }
  0x45   : > { %s1356_s7 = scalar_lea.hbm %s1477_s0, %s888_s22  ;;  %s158_s29 = scalar_lea.vmem [#allocation2], %s855_s20 }
  0x46   : > { %s165_s8 = sshll.u32 %s158_s29, 4  ;;  %s1360_s9 = scalar_lea.sflag [#allocation3], %s154_s27  ;;  %s1358_s8 = int_to_ptr.vmem [resolvable:$true] %s165_s8 }
  0x47   : > { %s1092_s10 = scalar_lea.hbm %s1356_s7, 512  ;;  %p1494_p7 = scmp.ne.s32.totalorder %s1493_s30, 0 }
  0x48   : > { %p1093_p9 = scmp.ne.s32.totalorder %s1356_s7, %s1092_s10  ;;  %s1097_s28 = scalar_lea.hbm %s1477_s0, 1024 }
  0x49   : > { %p1094_p1 = pneg %p1494_p7  ;;  %p1098_p12 = scmp.lt.u32.totalorder %s1356_s7, %s1477_s0 }
  0x4a   : > { %p1099_p13 = scmp.lt.u32.totalorder %s1097_s28, %s1092_s10  ;;  %p1101_p8 = scmp.lt.u32.totalorder %s1092_s10, %s1356_s7 }
  0x4b   : > { %p1095_p6 = pnand %p1094_p1, %p1093_p9 }
  0x4c   : > { %p1100_p3 = por %p1099_p13, %p1098_p12 }
  0x4d   : > { %p1096_p11 = pneg %p1095_p6 }
  0x4e   : > { %p1102_p4 = por %p1101_p8, %p1100_p3 }
  0x50   : > { %p1103_p5 = pnand %p1102_p4, %p1096_p11 }
  0x52   : > { %1106 = shalt.err (!%p1103_p5)
}
  0x53   : > { %s1107_s27 = scalar_lea.vmem %s1358_s8, 512  ;;  %s1196_s20 = smov [#allocation2]  }
  0x54   : > { %p1108_p10 = scmp.ne.s32.totalorder %s1358_s8, %s1107_s27  ;;  %s1112_s22 = sshll.u32 %s1196_s20, 4  ;;  %s1113_s22 = int_to_ptr.vmem [resolvable:$false] %s1112_s22 }
  0x55   : > { %s1114_s4 = scalar_lea.vmem %s1113_s22, 1024  ;;  %p1115_p9 = scmp.lt.s32.totalorder %s1358_s8, %s1113_s22 }
  0x56   : > { %p1110_p2 = pnand %p1108_p10, %p1094_p1  ;;  %p1116_p6 = scmp.lt.s32.totalorder %s1114_s4, %s1107_s27 }
  0x58   : > { %p1111_p0 = pneg %p1110_p2  ;;  %p1117_p12 = por %p1116_p6, %p1115_p9 }
  0x5a   : > { %p1118_p13 = pnand %p1117_p12, %p1111_p0 }
  0x5c   : > { %1121 = shalt.err (!%p1118_p13)
}
  0x5d   : > { %s1197_s6 = smov 128   ;;  %s1198_s29 = smov 8  }
  0x5e   : > { %958 = dma.hbm_to_vmem [thread:$0]  (!%p1494_p7), %s1356_s7, 512, %s1358_s8, %s1360_s9, %s1197_s6, %s1197_s6, %s1198_s29  }
  0x5f   : > { %p1495_p1 = scmp.ne.s32.totalorder %s1490_s26, 0 }
  0x60   : > { %s1391_s10 = sand.u32 (!%p1495_p1), 1, %s1184_s13   ;;  %p1496_p11 = scmp.ne.s32.totalorder (!%p1495_p1), %s1487_s23, 0 }
  0x61   : > { %177 = sbr.rel (%p1495_p1) target bundleno = 835 (0x343), region = 32  ;;  %s859_s5 = sshll.u32 (!%p1495_p1), %s1391_s10, 5 }
  0x62   : > { %s180_s11 = scalar_lea.sflag (!%p1495_p1), [#allocation3], %s1391_s10  ;;  %s183_s28 = scalar_lea.vmem (!%p1495_p1), [#allocation2], %s859_s5 }
  0x68   : > { %1167 = dma.done.wait (%p1496_p11), %s180_s11, 512  }
  0x69   : > { %1169 = vsyncadd (%p1496_p11), %s180_s11, 4294966784  ;;  %p1497_p7 = scmp.eq.s32.totalorder %s1243_s16, 0 }
  0x6b   : > { %1171 = dma.done.wait (%p1497_p7), [#allocation6], 256   ;;  %p1498_p3 = pmov %p1497_p7 }
  0x6c   : > { %vm219_vm0 = vcmask 64512   ;;  %v218_v0 = vld [vmem:[#allocation5] sm:$0xff]  ;;  %v215_v2 = vld [vmem:[%s183_s28 + $0x8] sm:$0xff]  ;;  %v216_v3 = vld [vmem:[%s183_s28 + $0x10] sm:$0xff]  ;;  %vm735_vm1 = vcmask 125952   ;;  %s213_s23 = scalar_lea.vmem [#allocation8], %s859_s5 }
  0x6d   : > { %1173 = vsyncadd (%p1498_p3), [#allocation6], 4294967040  ;;  %v214_v1 = vld [vmem:[%s183_s28] sm:$0xff]  ;;  %912 = vmatprep.subr.mxu0 %v218_v0  ;;  %v217_v4 = vld [vmem:[%s183_s28 + $0x18] sm:$0xff]  ;;  %s897_s26 = sshll.u32 %s1243_s16, 9  ;;  %s758_s30 = sshll.u32 %s213_s23, 4  ;;  %s1431_s30 = int_to_ptr.vmem [resolvable:$true] %s758_s30 }
  0x6e   : > { %914 = vmatprep.mubr.msk.f32.mxu0 %vm219_vm0, %v214_v1  ;;  %913 = vmatpush3.msra.mxu0 %v218_v0  ;;  %v445_v7 = vld [vmem:[#allocation7] sm:$0xff]  ;;  %s1429_s9 = scalar_lea.hbm %s1480_s3, %s897_s26  ;;  %s745_s16 = scalar_lea.sflag [#allocation4], %s1391_s10 }
  0x6f   : > { %915 = vmatmul.mubr.msk.f32.vlgmr.msra.gmra.mrb[0].mxu0 %vm219_vm0, %v215_v2  ;;  %934 = vmatprep.subr.mxu1 %v445_v7  ;;  %s1122_s17 = scalar_lea.vmem %s1431_s30, 512  ;;  %p1499_p4 = scmp.ne.s32.totalorder %s1488_s24, 0 }
  0x70   : > { %917 = vmatprep.mubr.msk.f32.mxu0 %vm219_vm0, %v216_v3  ;;  %920 = vmatprep.subr.mxu0 %v445_v7  ;;  %p1123_p8 = scmp.ne.s32.totalorder %s1431_s30, %s1122_s17  ;;  %s1199_s19 = smov [#allocation8]  }
  0x71   : > { %935 = vmatpush3.msra.mxu1 %v445_v7  ;;  %921 = vmatpush3.msra.mxu0 %v445_v7  ;;  %s1126_s27 = sshll.u32 %s1199_s19, 4  ;;  %s1127_s27 = int_to_ptr.vmem [resolvable:$false] %s1126_s27 }
  0x72   : > { %p1124_p5 = pnand %p1123_p8, %p1499_p4  ;;  %s1128_s20 = scalar_lea.vmem %s1127_s27, 1024 }
  0x73   : > { %918 = vmatmul.mubr.msk.f32.gmra.mrb[2].mxu0 %vm219_vm0, %v217_v4  ;;  %p1129_p2 = scmp.lt.s32.totalorder %s1431_s30, %s1127_s27  ;;  %p1130_p0 = scmp.lt.s32.totalorder %s1128_s20, %s1122_s17 }
  0x74   : > { %p1125_p10 = pneg %p1124_p5 }
  0x75   : > { %p1131_p9 = por %p1130_p0, %p1129_p2 }
  0x77   : > { %p1132_p6 = pnand %p1131_p9, %p1125_p10 }
 0x142   : > { %v916_v5 = vpop.f32.mrb[0].mxu0 }
 0x143   : > { %349 = vxpose.xlu0.b32.start.end [1/1] (short) (narrow) %v916_v5, 16  ;;  %v298_v6 = vpop.f32.mrb[1].mxu0 }
 0x144   : > { %317 = vxpose.xlu1.b32.start.end [1/1] (short) (narrow) %v298_v6, 16 }
 0x146   : > { %v919_v8 = vpop.f32.mrb[2].mxu0 }
 0x147   : > { %v308_v9 = vpop.f32.mrb[3].mxu0 }
 0x148   : > { %381 = vxpose.xlu0.b32.start.end [1/1] (short) (narrow) %v308_v9, 16 }
 0x149   : > { %413 = vxpose.xlu1.b32.start.end [1/1] (short) (narrow) %v919_v8, 16 }
 0x1c3   : > { %v365_v10 = vpop.trf.xlu0 }
 0x1c4   : > { %925 = vmatprep.mubr.msk.f32.mxu1 %vm219_vm0, %v365_v10  ;;  %v333_v11 = vpop.trf.xlu1 }
 0x1c5   : > { %922 = vmatprep.mubr.msk.f32.mxu0 %vm219_vm0, %v333_v11 }
 0x1c7   : > { %v366_v12 = vpop.trf.xlu0 }
 0x1c8   : > { %926 = vmatmul.mubr.msk.f32.vlgmr.msra.gmra.mrb[0].mxu1 %vm219_vm0, %v366_v12  ;;  %v334_v13 = vpop.trf.xlu1 }
 0x1c9   : > { %923 = vmatmul.mubr.msk.f32.vlgmr.msra.gmra.mrb[4].mxu0 %vm219_vm0, %v334_v13 }
 0x1cb   : > { %v397_v14 = vpop.trf.xlu0 }
 0x1cc   : > { %928 = vmatprep.mubr.msk.f32.mxu1 %vm219_vm0, %v397_v14  ;;  %v429_v15 = vpop.trf.xlu1 }
 0x1cf   : > { %v398_v16 = vpop.trf.xlu0 }
 0x1d0   : > { %929 = vmatmul.mubr.msk.f32.gmra.mrb[2].mxu1 %vm219_vm0, %v398_v16  ;;  %v430_v17 = vpop.trf.xlu1 }
 0x1d1   : > { %931 = vmatprep.mubr.msk.f32.mxu1 %vm219_vm0, %v429_v15 }
 0x1d4   : > { %932 = vmatmul.mubr.msk.f32.gmra.mrb[4].mxu1 %vm219_vm0, %v430_v17 }
 0x29b   : > { %v927_v18 = vpop.f32.mrb[0].mxu1 }
 0x29c   : > { %v924_v19 = vpop.f32.mrb[4].mxu0  ;;  %v546_v20 = vpop.f32.mrb[1].mxu1 }
 0x29d   : > { %v1010_v21 = vpack.i.bf16 %v927_v18, %v924_v19  ;;  %v536_v22 = vpop.f32.mrb[5].mxu0 }
 0x29e   : > { %v1008_v23 = vpack.i.bf16 %v546_v20, %v536_v22 }
 0x2a0   : > { %1009 = vxpose.xlu0.b32.start [1/2] (short) (narrow) %v1008_v23, 16 }
 0x2a3   : > { %v930_v24 = vpop.f32.mrb[2].mxu1 }
 0x2a4   : > { %v556_v25 = vpop.f32.mrb[3].mxu1  ;;  %1011 = vxpose.xlu0.b32.end [2/2] (short) (narrow) %v1010_v21, 16 }
 0x2a7   : > { %v933_v26 = vpop.f32.mrb[4].mxu1 }
 0x2a8   : > { %v1024_v27 = vpack.i.bf16 %v933_v26, %v930_v24  ;;  %v566_v28 = vpop.f32.mrb[5].mxu1 }
 0x2a9   : > { %v1022_v29 = vpack.i.bf16 %v566_v28, %v556_v25 }
 0x2ab   : > { %1023 = vxpose.xlu1.b32.start [1/2] (short) (narrow) %v1022_v29, 16 }
 0x2af   : > { %1025 = vxpose.xlu1.b32.end [2/2] (short) (narrow) %v1024_v27, 16 }
 0x320   : > { %v1012_v30 = vpop.trf.xlu0 }
 0x321   : > { %v1016_v31 = vunpack.i.h.bf16 %v1012_v30  ;;  %v1013_v32 = vunpack.i.l.bf16 %v1012_v30 }
 0x323   : > { %v891_v33 = vpack.c.bf16 %v1016_v31, %v1016_v31  ;;  %v889_v34 = vpack.c.bf16 %v1013_v32, %v1013_v32 }
 0x324   : > { %v1017_v35 = vpop.trf.xlu0 }
 0x325   : > { %738 = vst.msk [vmem:[%s213_s23 + $0x8] sm:$0xf] %vm735_vm1, %v891_v33  ;;  %736 = vst.msk [vmem:[%s213_s23] sm:$0xf] %vm735_vm1, %v889_v34  ;;  %v1021_v36 = vunpack.i.h.bf16 %v1017_v35  ;;  %v1018_v37 = vunpack.i.l.bf16 %v1017_v35 }
 0x327   : > { %v892_v38 = vpack.c.bf16 %v1021_v36, %v1021_v36  ;;  %v890_v39 = vpack.c.bf16 %v1018_v37, %v1018_v37 }
 0x329   : > { %739 = vst.msk [vmem:[%s213_s23 + $0xc] sm:$0xf] %vm735_vm1, %v892_v38  ;;  %737 = vst.msk [vmem:[%s213_s23 + $0x4] sm:$0xf] %vm735_vm1, %v890_v39 }
 0x32b   : > { %v1026_v40 = vpop.trf.xlu1 }
 0x32c   : > { %v1030_v41 = vunpack.i.h.bf16 %v1026_v40  ;;  %v1027_v42 = vunpack.i.l.bf16 %v1026_v40 }
 0x32e   : > { %v895_v43 = vpack.c.bf16 %v1030_v41, %v1030_v41  ;;  %v893_v44 = vpack.c.bf16 %v1027_v42, %v1027_v42 }
 0x32f   : > { %v1031_v45 = vpop.trf.xlu1 }
 0x330   : > { %742 = vst.msk [vmem:[%s213_s23 + $0x18] sm:$0xf] %vm735_vm1, %v895_v43  ;;  %740 = vst.msk [vmem:[%s213_s23 + $0x10] sm:$0xf] %vm735_vm1, %v893_v44  ;;  %v1035_v46 = vunpack.i.h.bf16 %v1031_v45  ;;  %v1032_v47 = vunpack.i.l.bf16 %v1031_v45 }
 0x332   : > { %v896_v48 = vpack.c.bf16 %v1035_v46, %v1035_v46  ;;  %v894_v49 = vpack.c.bf16 %v1032_v47, %v1032_v47 }
 0x334   : > { %743 = vst.msk [vmem:[%s213_s23 + $0x1c] sm:$0xf] %vm735_vm1, %v896_v48  ;;  %741 = vst.msk [vmem:[%s213_s23 + $0x14] sm:$0xf] %vm735_vm1, %v894_v49 }
 0x335   : > { %1135 = shalt.err (!%p1132_p6)
}
 0x336   : > { %s1136_s22 = scalar_lea.hbm %s1429_s9, 512  ;;  %s1140_s29 = scalar_lea.hbm %s1480_s3, 1024 }
 0x337   : > { %p1137_p12 = scmp.ne.s32.totalorder %s1429_s9, %s1136_s22  ;;  %p1141_p11 = scmp.lt.u32.totalorder %s1429_s9, %s1480_s3 }
 0x338   : > { %p1142_p7 = scmp.lt.u32.totalorder %s1140_s29, %s1136_s22  ;;  %p1144_p8 = scmp.lt.u32.totalorder %s1136_s22, %s1429_s9 }
 0x339   : > { %p1138_p13 = pnand %p1137_p12, %p1499_p4 }
 0x33a   : > { %p1143_p3 = por %p1142_p7, %p1141_p11 }
 0x33b   : > { %p1139_p1 = pneg %p1138_p13 }
 0x33c   : > { %p1145_p5 = por %p1144_p8, %p1143_p3 }
 0x33e   : > { %p1146_p10 = pnand %p1145_p5, %p1139_p1 }
 0x340   : > { %1149 = shalt.err (!%p1146_p10)
}
 0x341   : > { %s1200_s28 = smov 64   ;;  %s1201_s23 = smov 4  }
 0x342   : > { %946 = dma.vmem_to_hbm [thread:$0]  (%p1499_p4), %s1431_s30, 512, %s1429_s9, %s745_s16, %s1200_s28, %s1200_s28, %s1201_s23  }
 0x343 PF: > { %s773_s26 = sand.u32 1, %s1180_s12   ;;  %p1500_p2 = scmp.ne.s32.totalorder %s1489_s25, 0 }
 0x344   : > { %p1501_p0 = scmp.ge.s32.totalorder %s1192_s15, 2  ;;  %s774_s7 = scalar_lea.sflag [#allocation4], %s773_s26 }
 0x346   : > { %p960_p9 = pnand %p1501_p0, %p1500_p2 }
 0x348   : > { %1175 = dma.done.wait (!%p960_p9), %s774_s7, 512  }
 0x349   : > { %1177 = vsyncadd (!%p960_p9), %s774_s7, 4294966784  ;;  %p17_p6 = scmp.ge.s32.totalorder %s1247_s18, 4   ;;  %s1502_s12 = smov %s1184_s13 }
 0x34a   : > { %s1503_s13 = smov %s1188_s14  ;;  %s1504_s14 = smov %s1259_s21 }
 0x34b   : > { %s1505_s15 = smov %s1247_s18  ;;  %19 = sbr.rel (!%p17_p6) target bundleno = 6 (0x6), region = 85 }
 0x352   :  { %779 = vsyncpa [#allocation3], 1 }
 0x353   :  { %781 = vsyncpa [#allocation3 + $0x1], 1 }
 0x354   :  { %782 = vsyncpa [#allocation6], 1 }
 0x355   :  { %783 = vsyncpa [#allocation4], 1 }
 0x356   :  { %785 = vsyncpa [#allocation4 + $0x1], 1 }

</bundles_post_ra>
